<compile_context>
chip_gen: v5e
topology: v5e:2x2
jax: 0.10.0
libtpu: 0.0.40
codegen_flags: <defaults>
</compile_context>

<pallas_src>
import math
import functools

import jax
import jax.numpy as jnp
from jax import lax
from jax.experimental import pallas as pl
from jax.experimental.pallas import tpu as pltpu


# ---------------------------------------------------------------------------
# Tile-size helper: largest tile <= target that divides `dim` and is a multiple
# of `align` (8 for sublane axes, 128 for lane axes); falls back to the full
# dimension, which is always a legal block shape.
# ---------------------------------------------------------------------------
def _pick_tile(dim, target, align):
    if dim <= target:
        return dim
    t = (target // align) * align
    while t >= align:
        if dim % t == 0:
            return t
        t -= align
    return dim


# ---------------------------------------------------------------------------
# Tiled linear kernel: y = x @ W + b
# ---------------------------------------------------------------------------
def _linear_kernel(x_ref, w_ref, b_ref, o_ref, acc_ref):
    @pl.when(pl.program_id(2) == 0)
    def _():
        acc_ref[...] = jnp.zeros_like(acc_ref)

    acc_ref[...] += jnp.dot(x_ref[...], w_ref[...],
                            preferred_element_type=jnp.float32)

    @pl.when(pl.program_id(2) == pl.num_programs(2) - 1)
    def _():
        o_ref[...] = (acc_ref[...] + b_ref[...].astype(jnp.float32)).astype(o_ref.dtype)


def pallas_linear(x2d, w, b, out_dtype=None, *, tm=256, tn=256, tk=512):
    """x2d: (M, K), w: (K, N), b: (N,) -> (M, N). Tiled + pipelined matmul."""
    M, K = x2d.shape
    _, N = w.shape
    out_dtype = out_dtype or x2d.dtype

    tm = _pick_tile(M, tm, 8)
    tn = _pick_tile(N, tn, 128)
    tk = _pick_tile(K, tk, 128)
    grid = (M // tm, N // tn, K // tk)

    return pl.pallas_call(
        _linear_kernel,
        out_shape=jax.ShapeDtypeStruct((M, N), out_dtype),
        grid_spec=pltpu.PrefetchScalarGridSpec(
            num_scalar_prefetch=0,
            grid=grid,
            in_specs=[
                pl.BlockSpec((tm, tk), lambda i, j, k: (i, k)),
                pl.BlockSpec((tk, tn), lambda i, j, k: (k, j)),
                pl.BlockSpec((1, tn), lambda i, j, k: (0, j)),
            ],
            out_specs=pl.BlockSpec((tm, tn), lambda i, j, k: (i, j)),
            scratch_shapes=[pltpu.VMEM((tm, tn), jnp.float32)],
        ),
        compiler_params=pltpu.CompilerParams(
            dimension_semantics=("parallel", "parallel", "arbitrary")),
    )(x2d, w, b.reshape(1, N))


# ---------------------------------------------------------------------------
# Attention (+ fused output projection) kernel.
# Per grid step: one batch element, one tile of tq query rows, ALL heads.
#   q_ref : (tq, H*Dh)     k_ref/v_ref : (Sk, H*Dh)
#   wo_ref: (H*Dh, Dout)   bo_ref      : (1, Dout)
#   o_ref : (tq, Dout)     (lane-dense write)
# ---------------------------------------------------------------------------
def _attn_kernel(q_ref, k_ref, v_ref, wo_ref, bo_ref, o_ref, *,
                 head, head_size, scale):
    f32 = jnp.float32
    # Fold 1/sqrt(Dh) into Q once ((tq, H*Dh) elems) instead of the (tq, Sk) scores.
    q = q_ref[...].astype(f32) * scale
    k = k_ref[...]
    v = v_ref[...]
    in_dt = k.dtype

    outs = []
    for h in range(head):                       # static unroll over heads
        lo, hi = h * head_size, (h + 1) * head_size
        qh = q[:, lo:hi]                        # (tq, Dh) f32
        kh = k[:, lo:hi].astype(f32)            # (Sk, Dh) f32
        vh = v[:, lo:hi]                        # (Sk, Dh)

        # Q @ K^T as a contraction over the last dims (no explicit transpose of K).
        s = lax.dot_general(qh, kh, (((1,), (1,)), ((), ())),
                            preferred_element_type=f32)            # (tq, Sk)
        m = jnp.max(s, axis=-1, keepdims=True)                     # XLU reduce
        p = jnp.exp(s - m)                                         # EUP
        denom = jnp.sum(p, axis=-1, keepdims=True)                 # (tq, 1)

        oh = jnp.dot(p.astype(in_dt), vh,
                     preferred_element_type=f32)                   # (tq, Dh)
        # Deferred softmax normalization on the small PV output, reciprocal-multiply.
        outs.append(oh * pl.reciprocal(denom, approx=False))

    ctx = jnp.concatenate(outs, axis=-1)                           # (tq, H*Dh)

    # Fused output projection (linear_s[-1]) epilogue: one MXU matmul with K=H*Dh.
    out = jnp.dot(ctx.astype(wo_ref.dtype), wo_ref[...],
                  preferred_element_type=f32)
    o_ref[...] = (out + bo_ref[...].astype(f32)).astype(o_ref.dtype)


def pallas_attention_out_proj(q, k, v, w_o, b_o, *, head, head_size,
                              out_dtype=None, tq=256):
    """q: (B, Sq, H*Dh), k/v: (B, Sk, H*Dh), w_o: (H*Dh, Dout) -> (B, Sq, Dout)."""
    B, Sq, HDh = q.shape
    Sk = k.shape[1]
    Dout = w_o.shape[1]
    out_dtype = out_dtype or q.dtype
    scale = 1.0 / math.sqrt(head_size)

    tq = _pick_tile(Sq, tq, 8)
    grid = (B, Sq // tq)      # qi is the inner axis -> K/V blocks revisited, not re-DMA'd

    kernel = functools.partial(_attn_kernel, head=head,
                               head_size=head_size, scale=scale)

    return pl.pallas_call(
        kernel,
        out_shape=jax.ShapeDtypeStruct((B, Sq, Dout), out_dtype),
        grid_spec=pltpu.PrefetchScalarGridSpec(
            num_scalar_prefetch=0,
            grid=grid,
            in_specs=[
                pl.BlockSpec((pl.Squeezed(), tq, HDh), lambda b, qi: (b, qi, 0)),
                pl.BlockSpec((pl.Squeezed(), Sk, HDh), lambda b, qi: (b, 0, 0)),
                pl.BlockSpec((pl.Squeezed(), Sk, HDh), lambda b, qi: (b, 0, 0)),
                pl.BlockSpec((HDh, Dout), lambda b, qi: (0, 0)),
                pl.BlockSpec((1, Dout), lambda b, qi: (0, 0)),
            ],
            out_specs=pl.BlockSpec((pl.Squeezed(), tq, Dout),
                                   lambda b, qi: (b, qi, 0)),
        ),
        compiler_params=pltpu.CompilerParams(
            dimension_semantics=("parallel", "parallel")),
    )(q, k, v, w_o, b_o.reshape(1, Dout))


# ---------------------------------------------------------------------------
# Module wrapper (parameter setup + free reshapes are plain JAX glue)
# ---------------------------------------------------------------------------
class MultiHeadedAttentionPallas:
    def __init__(self, head, hidden_sizes, dropout_rate, input_sizes=None, *,
                 key, compute_dtype=jnp.float32):
        if isinstance(hidden_sizes, int):
            hidden_sizes = [hidden_sizes] * 4
        if input_sizes is None:
            input_sizes = hidden_sizes
        for hs in hidden_sizes:
            assert hs % head == 0
        self.head = head
        self.head_size = hidden_sizes[0] // head
        self.hidden_size = hidden_sizes[-1]
        # compute_dtype=jnp.bfloat16 halves HBM/VMEM traffic for MXU operands on
        # v6e/v7x; softmax math and accumulators stay f32 inside the kernels.
        self.compute_dtype = compute_dtype
        # dropout_rate unused: nn.Dropout is never applied in the reference forward().

        # Deterministic init mimicking nn.Linear (uniform in +-1/sqrt(fan_in)).
        self.weights = []
        self.biases = []
        keys = jax.random.split(key, 2 * len(hidden_sizes))
        for i, (din, dout) in enumerate(zip(input_sizes, hidden_sizes)):
            bound = 1.0 / math.sqrt(din)
            w = jax.random.uniform(keys[2 * i], (din, dout),
                                   minval=-bound, maxval=bound, dtype=jnp.float32)
            b = jax.random.uniform(keys[2 * i + 1], (dout,),
                                   minval=-bound, maxval=bound, dtype=jnp.float32)
            self.weights.append(w)
            self.biases.append(b)

    def __call__(self, query, key, value, mask=None, *, tq=256):
        assert mask is None  # TODO(synk): masked path not implemented
        cd = self.compute_dtype

        def project(x, w, b):
            b_, s_, d_ = x.shape
            y = pallas_linear(x.reshape(b_ * s_, d_).astype(cd),
                              w.astype(cd), b, out_dtype=cd)
            return y.reshape(b_, s_, -1)            # (b, s, H*Dh) -- no transpose

        q = project(query, self.weights[0], self.biases[0])
        k = project(key, self.weights[1], self.biases[1])
        v = project(value, self.weights[2], self.biases[2])

        # Attention over all heads per (batch, q-tile) with fused output projection.
        return pallas_attention_out_proj(
            q, k, v, self.weights[3].astype(cd), self.biases[3],
            head=self.head, head_size=self.head_size,
            out_dtype=query.dtype, tq=tq)


# ---------------------------------------------------------------------------
# Pure-JAX reference (mirrors the PyTorch forward) for a sanity check
# ---------------------------------------------------------------------------
def reference_forward(mha, query, key, value):
    B, Sq, _ = query.shape
    H, Dh = mha.head, mha.head_size

    def project(x, w, b):
        y = x @ w + b
        b_, s_, _ = x.shape
        return y.reshape(b_, s_, H, Dh).transpose(0, 2, 1, 3)

    q = project(query, mha.weights[0], mha.biases[0])
    k = project(key, mha.weights[1], mha.biases[1])
    v = project(value, mha.weights[2], mha.biases[2])
    scores = jnp.einsum("bhqd,bhkd->bhqk", q, k) / math.sqrt(Dh)
    p = jax.nn.softmax(scores, axis=-1)
    x = jnp.einsum("bhqk,bhkd->bhqd", p, v)
    x = x.transpose(0, 2, 1, 3).reshape(B * Sq, H * Dh)
    return (x @ mha.weights[3] + mha.biases[3]).reshape(B, Sq, mha.hidden_size)


if __name__ == "__main__":
    root = jax.random.PRNGKey(0)
    (k_params, k_q, k_k, k_v, k_x, k_w, k_b,
     k_params2, k_q2, k_k2, k_v2) = jax.random.split(root, 11)

    # --- full module test (small shapes) ---
    B, S, hidden, head = 2, 8, 32, 4
    mha = MultiHeadedAttentionPallas(head, hidden, dropout_rate=0.1, key=k_params)

    query = jax.random.normal(k_q, (B, S, hidden), dtype=jnp.float32)
    key_in = jax.random.normal(k_k, (B, S, hidden), dtype=jnp.float32)
    value = jax.random.normal(k_v, (B, S, hidden), dtype=jnp.float32)

    out = jax.block_until_ready(mha(query, key_in, value))
    ref = reference_forward(mha, query, key_in, value)
    assert out.shape == (B, S, hidden)
    assert jnp.allclose(out, ref, rtol=1e-4, atol=1e-4), "mismatch vs reference"

    # --- medium-shape test: exercises multi-tile q grid + K/V block revisiting ---
    B2, S2, hidden2, head2 = 2, 128, 256, 4
    mha2 = MultiHeadedAttentionPallas(head2, hidden2, dropout_rate=0.1, key=k_params2)
    q2 = jax.random.normal(k_q2, (B2, S2, hidden2), dtype=jnp.float32)
    k2 = jax.random.normal(k_k2, (B2, S2, hidden2), dtype=jnp.float32)
    v2 = jax.random.normal(k_v2, (B2, S2, hidden2), dtype=jnp.float32)
    out2 = jax.block_until_ready(mha2(q2, k2, v2, tq=64))
    ref2 = reference_forward(mha2, q2, k2, v2)
    assert out2.shape == (B2, S2, hidden2)
    assert jnp.allclose(out2, ref2, rtol=1e-3, atol=1e-3), "medium-shape mismatch"

    # --- structural check of the tiled linear (multi-tile grid incl. K accumulation) ---
    xt = jax.random.normal(k_x, (256, 384), dtype=jnp.float32)
    wt = jax.random.normal(k_w, (384, 256), dtype=jnp.float32) / math.sqrt(384.0)
    bt = jax.random.normal(k_b, (256,), dtype=jnp.float32)
    yt = jax.block_until_ready(pallas_linear(xt, wt, bt, tm=128, tn=128, tk=128))
    assert jnp.allclose(yt, xt @ wt + bt, rtol=1e-2, atol=1e-2), "tiled linear mismatch"

    print("KERNEL_OK")
</pallas_src>

<mosaic_0001>
module attributes {stable_mosaic.version = 11 : i64} {
  func.func @_linear_kernel(%arg0: i32, %arg1: i32, %arg2: i32, %arg3: memref<16x32xf32, #tpu.memory_space<vmem>>, %arg4: memref<32x32xf32, #tpu.memory_space<vmem>>, %arg5: memref<1x32xf32, #tpu.memory_space<vmem>>, %arg6: memref<16x32xf32, #tpu.memory_space<vmem>>, %arg7: memref<16x32xf32, #tpu.memory_space<vmem>>) attributes {dimension_semantics = [#tpu.dimension_semantics<parallel>, #tpu.dimension_semantics<parallel>, #tpu.dimension_semantics<arbitrary>], iteration_bounds = array<i64: 1, 1, 1>, scalar_prefetch = 0 : i64, scratch_operands = 1 : i64, tpu.core_type = #tpu.core_type<tc>, window_params = [{transform_indices = @transform_0, window_bounds = array<i64: 16, 32>}, {transform_indices = @transform_1, window_bounds = array<i64: 32, 32>}, {transform_indices = @transform_2, window_bounds = array<i64: 1, 32>}, {transform_indices = @transform_3, window_bounds = array<i64: 16, 32>}]} {
    %c0_i32 = arith.constant 0 : i32
    %0 = arith.cmpi eq, %arg2, %c0_i32 : i32
    %1 = arith.extui %0 : i1 to i32
    %c0_i32_0 = arith.constant 0 : i32
    %2 = arith.cmpi ne, %1, %c0_i32_0 : i32
    scf.if %2 {
      %cst_10 = arith.constant 0.000000e+00 : f32
      %12 = vector.broadcast %cst_10 : f32 to vector<16x32xf32>
      %c0_11 = arith.constant 0 : index
      %c0_12 = arith.constant 0 : index
      %13 = vector.load %arg7[%c0_11, %c0_12] : memref<16x32xf32, #tpu.memory_space<vmem>>, vector<16x32xf32>
      tpu.vector_store %arg7[%c0_11, %c0_12], %12 {strides = array<i32>} : memref<16x32xf32, #tpu.memory_space<vmem>>, vector<16x32xf32>,
    } else {
    }
    %c0 = arith.constant 0 : index
    %c0_1 = arith.constant 0 : index
    %3 = vector.load %arg7[%c0, %c0_1] : memref<16x32xf32, #tpu.memory_space<vmem>>, vector<16x32xf32>
    %c0_2 = arith.constant 0 : index
    %c0_3 = arith.constant 0 : index
    %4 = vector.load %arg3[%c0_2, %c0_3] : memref<16x32xf32, #tpu.memory_space<vmem>>, vector<16x32xf32>
    %c0_4 = arith.constant 0 : index
    %c0_5 = arith.constant 0 : index
    %5 = vector.load %arg4[%c0_4, %c0_5] : memref<32x32xf32, #tpu.memory_space<vmem>>, vector<32x32xf32>
    %cst = arith.constant dense<0.000000e+00> : vector<16x32xf32>
    %6 = tpu.matmul %4, %5, %cst {dimension_numbers = #tpu.dot_dimension_numbers<[1], [0], [0], [1], [0, 0, 1, 1], [], []>} : vector<16x32xf32>, vector<32x32xf32>, vector<16x32xf32> -> vector<16x32xf32>
    %7 = arith.addf %3, %6 : vector<16x32xf32>
    %c0_6 = arith.constant 0 : index
    %c0_7 = arith.constant 0 : index
    %8 = vector.load %arg7[%c0_6, %c0_7] : memref<16x32xf32, #tpu.memory_space<vmem>>, vector<16x32xf32>
    tpu.vector_store %arg7[%c0_6, %c0_7], %7 {strides = array<i32>} : memref<16x32xf32, #tpu.memory_space<vmem>>, vector<16x32xf32>,
    %c0_i32_8 = arith.constant 0 : i32
    %9 = arith.cmpi eq, %arg2, %c0_i32_8 : i32
    %10 = arith.extui %9 : i1 to i32
    %c0_i32_9 = arith.constant 0 : i32
    %11 = arith.cmpi ne, %10, %c0_i32_9 : i32
    scf.if %11 {
      %c0_10 = arith.constant 0 : index
      %c0_11 = arith.constant 0 : index
      %12 = vector.load %arg7[%c0_10, %c0_11] : memref<16x32xf32, #tpu.memory_space<vmem>>, vector<16x32xf32>
      %c0_12 = arith.constant 0 : index
      %c0_13 = arith.constant 0 : index
      %13 = vector.load %arg5[%c0_12, %c0_13] : memref<1x32xf32, #tpu.memory_space<vmem>>, vector<1x32xf32>
      %14 = vector.broadcast %13 : vector<1x32xf32> to vector<16x32xf32>
      %15 = arith.addf %12, %14 : vector<16x32xf32>
      %c0_14 = arith.constant 0 : index
      %c0_15 = arith.constant 0 : index
      %16 = vector.load %arg6[%c0_14, %c0_15] : memref<16x32xf32, #tpu.memory_space<vmem>>, vector<16x32xf32>
      tpu.vector_store %arg6[%c0_14, %c0_15], %15 {strides = array<i32>} : memref<16x32xf32, #tpu.memory_space<vmem>>, vector<16x32xf32>,
    } else {
    }
    return
  }
  func.func @transform_0(%arg0: i32, %arg1: i32, %arg2: i32) -> (i32, i32) {
    %c0_i32 = arith.constant 0 : i32
    return %arg0, %arg2 : i32, i32
  }
  func.func @transform_1(%arg0: i32, %arg1: i32, %arg2: i32) -> (i32, i32) {
    %c0_i32 = arith.constant 0 : i32
    return %arg2, %arg1 : i32, i32
  }
  func.func @transform_2(%arg0: i32, %arg1: i32, %arg2: i32) -> (i32, i32) {
    %c0_i32 = arith.constant 0 : i32
    %c0_i32_0 = arith.constant 0 : i32
    return %c0_i32, %arg1 : i32, i32
  }
  func.func @transform_3(%arg0: i32, %arg1: i32, %arg2: i32) -> (i32, i32) {
    %c0_i32 = arith.constant 0 : i32
    return %arg0, %arg1 : i32, i32
  }
}

</mosaic_0001>

<bundles_post_ra>
// kernel: tpu_custom_call.1
= control target key start
LH: loop header
LB: loop body
LE: loop exit
PB: predicated region body
PF: predicated region fallthrough
CT: control target
= control target key end

     0   :  { %8 = vsyncpa [#allocation4], 0  ;;  %s275_s0 = inlined_call_operand.hbm [shape: f32[16,32], index: 0, kind: input, shape index: {}]   ;;  %s276_s1 = inlined_call_operand.hbm [shape: f32[32,32], index: 1, kind: input, shape index: {}]   ;;  %s277_s2 = inlined_call_operand.vmem [shape: f32[1,32], index: 2, kind: input, shape index: {}]   ;;  %s278_s3 = inlined_call_operand.hbm [shape: f32[16,32], index: 3, kind: output, shape index: {}]  }
   0x1   :  { %9 = vsyncpa [#allocation7], 0 }
   0x2   :  { %10 = vsyncpa [#allocation5], 0  ;;  %s15_s14 = sshll.u32 %s275_s0, 4  ;;  %s220_s15 = smov [#allocation3]   ;;  %s16_s14 = int_to_ptr.hbm [resolvable:$true] %s15_s14 }
   0x3   :  { %s17_s16 = sshll.u32 %s220_s15, 4  ;;  %s28_s19 = sshll.u32 %s276_s1, 4  ;;  %s18_s16 = int_to_ptr.vmem [resolvable:$true] %s17_s16  ;;  %s29_s19 = int_to_ptr.hbm [resolvable:$true] %s28_s19 }
   0x4   :  { %s221_s20 = smov 128   ;;  %s222_s21 = smov 8  }
   0x5   :  { %23 = dma.hbm_to_vmem [thread:$0]  %s16_s14, 256, %s18_s16, [#allocation4], %s221_s20, %s221_s20, %s222_s21  }
   0x6   :  { %s223_s22 = smov [#allocation6]  }
   0x7   :  { %s30_s23 = sshll.u32 %s223_s22, 4  ;;  %s31_s23 = int_to_ptr.vmem [resolvable:$true] %s30_s23 }
   0x8   :  { %36 = dma.hbm_to_vmem [thread:$0]  %s29_s19, 512, %s31_s23, [#allocation7], %s221_s20, %s221_s20, %s222_s21  }
   0x9   :  { %214 = dma.done.wait [#allocation4], 256  }
   0xa   :  { %215 = vsyncadd [#allocation4], 4294967040 }
   0xb   :  { %216 = dma.done.wait [#allocation7], 512  }
   0xc   :  { %217 = vsyncadd [#allocation7], 4294966784  ;;  %vm51_vm0 = vcmask 261120   ;;  %v224_v0 = vmov 0.0   ;;  %v61_v1 = vld [vmem:[#allocation6 + $0x18] sm:$0xff]  ;;  %v60_v2 = vld [vmem:[#allocation6 + $0x10] sm:$0xff] }
   0xd   :  { %52 = vst.msk [vmem:[#allocation2] sm:$0xff] %vm51_vm0, %v224_v0  ;;  %81 = vmatpush.msra.mxu0 %v61_v1  ;;  %131 = vmatpush.msra.mxu1 %v61_v1  ;;  %v59_v3 = vld [vmem:[#allocation6 + $0x8] sm:$0xff]  ;;  %v58_v4 = vld [vmem:[#allocation6] sm:$0xff]  ;;  %v56_v5 = vld [vmem:[#allocation3] sm:$0xff]  ;;  %s225_s24 = smov [#allocation8]   ;;  %s115_s28 = sshll.u32 %s278_s3, 4  ;;  %s116_s28 = int_to_ptr.hbm [resolvable:$true] %s115_s28 }
   0xe   :  { %53 = vst.msk [vmem:[#allocation2 + $0x8] sm:$0xff] %vm51_vm0, %v224_v0  ;;  %v57_v6 = vld [vmem:[#allocation3 + $0x8] sm:$0xff]  ;;  %v141_v13 = vld [vmem:[%s277_s2] ss:$0 sm:$0xff]  ;;  %s113_s25 = sshll.u32 %s225_s24, 4  ;;  %s114_s25 = int_to_ptr.vmem [resolvable:$true] %s113_s25 }
   0xf   :  { %82 = vmatpush.msra.mxu0 %v60_v2  ;;  %132 = vmatpush.msra.mxu1 %v60_v2 }
  0x11   :  { %83 = vmatpush.msra.mxu0 %v59_v3  ;;  %133 = vmatpush.msra.mxu1 %v59_v3 }
  0x13   :  { %84 = vmatpush.msra.mxu0 %v58_v4  ;;  %134 = vmatpush.msra.mxu1 %v58_v4 }
  0x14   :  { %129 = vmatmul.msk.f32.vlgmr.msra.gmra.mxu0 %vm51_vm0, %v56_v5  ;;  %130 = vmatmul.msk.f32.vlgmr.msra.gmra.mxu1 %vm51_vm0, %v57_v6  ;;  %v54_v7 = vld [vmem:[#allocation2] sm:$0xff] }
  0x15   :  { %v55_v8 = vld [vmem:[#allocation2 + $0x8] sm:$0xff] }
  0x91   :  { %v86_v9 = vpop.f32.mrf.mxu0  ;;  %v89_v10 = vpop.f32.mrf.mxu1 }
  0x92   :  { %v92_v11 = vadd.f32 %v86_v9, %v54_v7  ;;  %v93_v12 = vadd.f32 %v89_v10, %v55_v8 }
  0x94   :  { %94 = vst.msk [vmem:[#allocation2] sm:$0xff] %vm51_vm0, %v92_v11 }
  0x95   :  { %95 = vst.msk [vmem:[#allocation2 + $0x8] sm:$0xff] %vm51_vm0, %v93_v12 }
  0x9b   :  { %v99_v14 = vld [vmem:[#allocation2] sm:$0xff] }
  0x9c   :  { %v100_v15 = vld [vmem:[#allocation2 + $0x8] sm:$0xff]  ;;  %v105_v16 = vadd.f32 %v141_v13, %v99_v14 }
  0x9d   :  { %v106_v17 = vadd.f32 %v141_v13, %v100_v15 }
  0x9e   :  { %107 = vst.msk [vmem:[#allocation8] sm:$0xff] %vm51_vm0, %v105_v16 }
  0x9f   :  { %108 = vst.msk [vmem:[#allocation8 + $0x8] sm:$0xff] %vm51_vm0, %v106_v17 }
  0xa0   :  { %121 = dma.vmem_to_hbm [thread:$0]  %s114_s25, 256, %s116_s28, [#allocation5], %s221_s20, %s221_s20, %s222_s21  }
  0xa1   :  { %218 = dma.done.wait [#allocation5], 256  }
  0xa2   :  { %219 = vsyncadd [#allocation5], 4294967040 }
  0xa3   :  { %126 = vsyncpa [#allocation4], 1 }
  0xa4   :  { %127 = vsyncpa [#allocation7], 1 }
  0xa5   :  { %128 = vsyncpa [#allocation5], 1 }

</bundles_post_ra>
